<compile_context>
chip_gen: v7x
topology: tpu7x:2x2x1
jax: 0.10.0
libtpu: 0.0.40
codegen_flags: <defaults>
</compile_context>

<pallas_src>
import functools

import jax
import jax.numpy as jnp
from jax.experimental import pallas as pl
from jax.experimental.pallas import tpu as pltpu


def ln_kernel(x_ref, gamma_ref, beta_ref, o_ref, *, eps, inv_emb):
    x = x_ref[...].astype(jnp.float32)                         # (tile_rows, emb)
    # Fused single pass over the lane axis: sum and sum-of-squares together.
    s = jnp.sum(x, axis=-1, keepdims=True)
    ss = jnp.sum(x * x, axis=-1, keepdims=True)
    mean = s * inv_emb
    var = jnp.maximum(ss * inv_emb - mean * mean, 0.0)          # clamp: cancellation guard
    inv_std = jax.lax.rsqrt(var + eps)                          # EUP slot
    y = (x - mean) * inv_std * gamma_ref[...] + beta_ref[...]   # gamma/beta already f32
    o_ref[...] = y.astype(o_ref.dtype)


# Target input bytes per streaming tile (~the 85-86%-of-roofline regime measured
# for 512-1024-element tiles on large arrays).
_TILE_BYTES_TARGET = 6 * 1024 * 1024


def _vmem_budgets():
    """(tile-sizing budget, vmem_limit_bytes) derived per TPU generation."""
    try:
        vmem_cap = int(pltpu.get_tpu_info().vmem_capacity_bytes)
    except Exception:
        vmem_cap = 64 * 1024 * 1024  # conservative fallback (v7x-sized)
    if vmem_cap >= 96 * 1024 * 1024:
        # v5e / v6e: 128 MiB physical VMEM -> bigger streaming tiles.
        return 56 * 1024 * 1024, 100 * 1024 * 1024
    # v7x (64 MiB physical) or unknown-small: stay conservative.
    return 24 * 1024 * 1024, 48 * 1024 * 1024


def _pick_tile_rows(rows, emb, dtype, sizing_budget):
    itemsize = jnp.dtype(dtype).itemsize
    # Double-buffered input + output tiles (io dtype) plus in-kernel f32 temps
    # (x and y live sets; the fused reduction dropped the `centered` temp).
    bytes_per_row = 2 * 2 * emb * itemsize + 2 * emb * 4
    max_rows_budget = max(1, sizing_budget // bytes_per_row)
    # Byte-capped tile: aim for ~_TILE_BYTES_TARGET of input per tile.
    target_rows = max(1, _TILE_BYTES_TARGET // max(1, emb * itemsize))
    # Sublane multiple: 8 rows for 32-bit, 16 for bf16/f16, 32 for 8-bit dtypes.
    mult = {4: 8, 2: 16, 1: 32}.get(itemsize, 8)
    if rows <= mult:
        return rows                      # tiny inputs: single full-extent block
    tile = min(rows, max_rows_budget, target_rows)
    tile = max(mult, (tile // mult) * mult)
    return tile


def layer_norm(x, gamma, beta, eps=1e-4, tile_rows=None):
    """LayerNorm over the last axis; accepts any leading shape."""
    orig_shape = x.shape
    emb = orig_shape[-1]
    x2 = x.reshape(-1, emb)
    rows = x2.shape[0]

    # Host-side f32 cast: fetched once (constant index map), no per-step cast.
    gamma2 = jnp.asarray(gamma, dtype=jnp.float32).reshape(1, emb)
    beta2 = jnp.asarray(beta, dtype=jnp.float32).reshape(1, emb)

    sizing_budget, vmem_limit = _vmem_budgets()
    if tile_rows is None:
        tile_rows = _pick_tile_rows(rows, emb, x2.dtype, sizing_budget)

    grid = (pl.cdiv(rows, tile_rows),)   # masked tail block handles ragged rows
    kernel = functools.partial(ln_kernel, eps=float(eps), inv_emb=1.0 / float(emb))

    out = pl.pallas_call(
        kernel,
        out_shape=jax.ShapeDtypeStruct((rows, emb), x2.dtype),
        grid_spec=pltpu.PrefetchScalarGridSpec(
            num_scalar_prefetch=0,
            grid=grid,
            in_specs=[
                pl.BlockSpec((tile_rows, emb), lambda i: (i, 0)),  # x tile
                pl.BlockSpec((1, emb), lambda i: (0, 0)),          # gamma (broadcast)
                pl.BlockSpec((1, emb), lambda i: (0, 0)),          # beta  (broadcast)
            ],
            out_specs=pl.BlockSpec((tile_rows, emb), lambda i: (i, 0)),
        ),
        compiler_params=pltpu.CompilerParams(
            dimension_semantics=("parallel",),
            vmem_limit_bytes=vmem_limit,
        ),
    )(x2, gamma2, beta2)
    return out.reshape(orig_shape)


def layer_norm_ref(x, gamma, beta, eps=1e-4):
    mean = jnp.mean(x, axis=-1, keepdims=True)
    var = jnp.mean((x - mean) ** 2, axis=-1, keepdims=True)
    std = jnp.sqrt(var + eps)
    out = (x - mean) / std
    return out * gamma + beta


if __name__ == "__main__":
    key = jax.random.PRNGKey(0)
    eps = 1e-4  # matches the custom LN module (PyTorch nn.LayerNorm default is 1e-5)

    # --- small smoke test matching the module: 8 sequence positions, emb=32 ---
    rows, emb = 8, 32
    x = jax.random.normal(key, (rows, emb), dtype=jnp.float32)
    gamma = jnp.ones((emb,), dtype=jnp.float32)   # LN.__init__: gamma = ones(emb)
    beta = jnp.zeros((emb,), dtype=jnp.float32)   # LN.__init__: beta  = zeros(emb)

    y = layer_norm(x, gamma, beta, eps=eps)
    y = jax.block_until_ready(y)
    y_ref = layer_norm_ref(x, gamma, beta, eps=eps)
    assert jnp.allclose(y, y_ref, atol=1e-5, rtol=1e-5), "mismatch vs reference (8x32)"

    # --- ragged-row check: exercises cdiv grid + masked tail block ---
    k2 = jax.random.fold_in(key, 1)
    rows2, emb2 = 52, 256                      # 52 not a multiple of the 16-row tile
    x2 = jax.random.normal(k2, (rows2, emb2), dtype=jnp.float32)
    g2 = jax.random.normal(jax.random.fold_in(key, 2), (emb2,), dtype=jnp.float32)
    b2 = jax.random.normal(jax.random.fold_in(key, 3), (emb2,), dtype=jnp.float32)
    y2 = jax.block_until_ready(layer_norm(x2, g2, b2, eps=eps, tile_rows=16))
    y2_ref = layer_norm_ref(x2, g2, b2, eps=eps)
    assert jnp.allclose(y2, y2_ref, atol=1e-5, rtol=1e-5), "mismatch vs reference (ragged)"

    # --- bf16 path: auto tile sizing + host-side f32 gamma/beta cast ---
    k3 = jax.random.fold_in(key, 4)
    x3 = jax.random.normal(k3, (64, 128), dtype=jnp.bfloat16)
    g3 = jnp.ones((128,), dtype=jnp.bfloat16)
    b3 = jnp.zeros((128,), dtype=jnp.bfloat16)
    y3 = jax.block_until_ready(layer_norm(x3, g3, b3, eps=eps))
    y3_ref = layer_norm_ref(x3.astype(jnp.float32), 1.0, 0.0, eps=eps).astype(jnp.bfloat16)
    assert jnp.allclose(y3.astype(jnp.float32), y3_ref.astype(jnp.float32),
                        atol=2e-2, rtol=2e-2), "mismatch vs reference (bf16)"

    print("KERNEL_OK")
</pallas_src>

<mosaic_0001>
module attributes {stable_mosaic.version = 11 : i64} {
  func.func @ln_kernel(%arg0: i32, %arg1: memref<8x32xf32, #tpu.memory_space<vmem>>, %arg2: memref<1x32xf32, #tpu.memory_space<vmem>>, %arg3: memref<1x32xf32, #tpu.memory_space<vmem>>, %arg4: memref<8x32xf32, #tpu.memory_space<vmem>>) attributes {dimension_semantics = [#tpu.dimension_semantics<parallel>], iteration_bounds = array<i64: 1>, scalar_prefetch = 0 : i64, scratch_operands = 0 : i64, tpu.core_type = #tpu.core_type<tc>, window_params = [{transform_indices = @transform_0, window_bounds = array<i64: 8, 32>}, {pipeline_mode = #tpu.pipeline_mode<synchronous>, transform_indices = @transform_1, window_bounds = array<i64: 1, 32>}, {pipeline_mode = #tpu.pipeline_mode<synchronous>, transform_indices = @transform_2, window_bounds = array<i64: 1, 32>}, {transform_indices = @transform_3, window_bounds = array<i64: 8, 32>}]} {
    %c0 = arith.constant 0 : index
    %c0_0 = arith.constant 0 : index
    %0 = vector.load %arg1[%c0, %c0_0] : memref<8x32xf32, #tpu.memory_space<vmem>>, vector<8x32xf32>
    %cst = arith.constant dense<0.000000e+00> : vector<8xf32>
    %1 = vector.multi_reduction <add>, %0, %cst [1] : vector<8x32xf32> to vector<8xf32>
    %2 = vector.shape_cast %1 : vector<8xf32> to vector<8x1xf32>
    %3 = arith.mulf %0, %0 : vector<8x32xf32>
    %cst_1 = arith.constant dense<0.000000e+00> : vector<8xf32>
    %4 = vector.multi_reduction <add>, %3, %cst_1 [1] : vector<8x32xf32> to vector<8xf32>
    %5 = vector.shape_cast %4 : vector<8xf32> to vector<8x1xf32>
    %cst_2 = arith.constant 3.125000e-02 : f32
    %6 = vector.broadcast %cst_2 : f32 to vector<8x1xf32>
    %7 = arith.mulf %2, %6 : vector<8x1xf32>
    %cst_3 = arith.constant 3.125000e-02 : f32
    %8 = vector.broadcast %cst_3 : f32 to vector<8x1xf32>
    %9 = arith.mulf %5, %8 : vector<8x1xf32>
    %10 = arith.mulf %7, %7 : vector<8x1xf32>
    %11 = arith.subf %9, %10 : vector<8x1xf32>
    %cst_4 = arith.constant 0.000000e+00 : f32
    %12 = vector.broadcast %cst_4 : f32 to vector<8x1xf32>
    %13 = arith.maximumf %11, %12 : vector<8x1xf32>
    %cst_5 = arith.constant 9.99999974E-5 : f32
    %14 = vector.broadcast %cst_5 : f32 to vector<8x1xf32>
    %15 = arith.addf %13, %14 : vector<8x1xf32>
    %16 = math.rsqrt %15 : vector<8x1xf32>
    %17 = vector.broadcast %7 : vector<8x1xf32> to vector<8x32xf32>
    %18 = arith.subf %0, %17 : vector<8x32xf32>
    %19 = vector.broadcast %16 : vector<8x1xf32> to vector<8x32xf32>
    %20 = arith.mulf %18, %19 : vector<8x32xf32>
    %c0_6 = arith.constant 0 : index
    %c0_7 = arith.constant 0 : index
    %21 = vector.load %arg2[%c0_6, %c0_7] : memref<1x32xf32, #tpu.memory_space<vmem>>, vector<1x32xf32>
    %22 = vector.broadcast %21 : vector<1x32xf32> to vector<8x32xf32>
    %23 = arith.mulf %20, %22 : vector<8x32xf32>
    %c0_8 = arith.constant 0 : index
    %c0_9 = arith.constant 0 : index
    %24 = vector.load %arg3[%c0_8, %c0_9] : memref<1x32xf32, #tpu.memory_space<vmem>>, vector<1x32xf32>
    %25 = vector.broadcast %24 : vector<1x32xf32> to vector<8x32xf32>
    %26 = arith.addf %23, %25 : vector<8x32xf32>
    %c0_10 = arith.constant 0 : index
    %c0_11 = arith.constant 0 : index
    %27 = vector.load %arg4[%c0_10, %c0_11] : memref<8x32xf32, #tpu.memory_space<vmem>>, vector<8x32xf32>
    tpu.vector_store %arg4[%c0_10, %c0_11], %26 {strides = array<i32>} : memref<8x32xf32, #tpu.memory_space<vmem>>, vector<8x32xf32>,
    return
  }
  func.func @transform_0(%arg0: i32) -> (i32, i32) {
    %c0_i32 = arith.constant 0 : i32
    %c0_i32_0 = arith.constant 0 : i32
    return %arg0, %c0_i32 : i32, i32
  }
  func.func @transform_1(%arg0: i32) -> (i32, i32) {
    %c0_i32 = arith.constant 0 : i32
    %c0_i32_0 = arith.constant 0 : i32
    %c0_i32_1 = arith.constant 0 : i32
    return %c0_i32, %c0_i32_0 : i32, i32
  }
  func.func @transform_2(%arg0: i32) -> (i32, i32) {
    %c0_i32 = arith.constant 0 : i32
    %c0_i32_0 = arith.constant 0 : i32
    %c0_i32_1 = arith.constant 0 : i32
    return %c0_i32, %c0_i32_0 : i32, i32
  }
  func.func @transform_3(%arg0: i32) -> (i32, i32) {
    %c0_i32 = arith.constant 0 : i32
    %c0_i32_0 = arith.constant 0 : i32
    return %arg0, %c0_i32 : i32, i32
  }
}

</mosaic_0001>

<bundles_post_ra>
// kernel: tpu_custom_call.1
= control target key start
LH: loop header
LB: loop body
LE: loop exit
PB: predicated region body
PF: predicated region fallthrough
CT: control target
= control target key end

     0   :  { %8 = vsyncpa [#allocation3], 0  ;;  %s186_s0 = inlined_call_operand.hbm [shape: f32[8,32], index: 0, kind: input, shape index: {}]   ;;  %s187_s1 = inlined_call_operand.vmem [shape: f32[1,32], index: 1, kind: input, shape index: {}]   ;;  %s188_s2 = inlined_call_operand.vmem [shape: f32[1,32], index: 2, kind: input, shape index: {}]   ;;  %s189_s3 = inlined_call_operand.hbm [shape: f32[8,32], index: 3, kind: output, shape index: {}]  }
   0x1   :  { %9 = vsyncpa [#allocation4], 0  ;;  %s131_s12 = smov [#allocation2]   ;;  %s83_s16 = scalar_lea.hbm %s186_s0, 128 }
   0x2   :  { %s16_s13 = sshll.u32 %s131_s12, 4  ;;  %p84_p0 = scmp.ne.s32.totalorder %s186_s0, %s83_s16  ;;  %s17_s13 = int_to_ptr.vmem [resolvable:$true] %s16_s13 }
   0x3   :  { %p87_p1 = scmp.lt.u32.totalorder %s83_s16, %s186_s0 }
   0x5   :  { %p89_p2 = pnand %p87_p1, %p84_p0 }
   0x7   :  { %92 = shalt.err (!%p89_p2)
}
   0x8   :  { %s93_s21 = scalar_lea.vmem %s17_s13, 128  ;;  %p98_p4 = scmp.lt.s32.totalorder %s17_s13, %s17_s13 }
   0x9   :  { %p94_p3 = scmp.ne.s32.totalorder %s17_s13, %s93_s21  ;;  %p99_p5 = scmp.lt.s32.totalorder %s93_s21, %s93_s21 }
   0xb   :  { %p100_p6 = por %p99_p5, %p98_p4 }
   0xd   :  { %p101_p7 = pnand %p100_p6, %p94_p3 }
   0xf   :  { %104 = shalt.err (!%p101_p7)
}
  0x10   :  { %19 = dma.hbm_to_vmem [thread:$0]  %s186_s0, 128, %s17_s13, [#allocation3]  }
  0x11   :  { %127 = dma.done.wait [#allocation3], 128  }
  0x12   :  { %128 = vsyncadd [#allocation3], 4294967168  ;;  %vm28_vm0 = vcmask 261120   ;;  %v27_v0 = vld [vmem:[#allocation2] sm:$0xff]  ;;  %s132_s27 = smov [#allocation5]  }
  0x13   :  { %v29_v1 = vsel %vm28_vm0, %v27_v0, 0.0  ;;  %v32_v2 = vmul.f32 %v27_v0, %v27_v0  ;;  %v77_v14 = vld [vmem:[%s187_s1] ss:$0 sm:$0xff]  ;;  %s68_s28 = sshll.u32 %s132_s27, 4  ;;  %s69_s28 = int_to_ptr.vmem [resolvable:$true] %s68_s28 }
  0x14   :  { %30 = vadd.xlane.f32.xlu0 %v29_v1  ;;  %v78_v16 = vld [vmem:[%s188_s2] ss:$0 sm:$0xff]  ;;  %s105_s29 = scalar_lea.vmem %s69_s28, 128  ;;  %p110_p9 = scmp.lt.s32.totalorder %s69_s28, %s69_s28 }
  0x15   :  { %v33_v3 = vsel %vm28_vm0, %v32_v2, 0.0  ;;  %p106_p8 = scmp.ne.s32.totalorder %s69_s28, %s105_s29  ;;  %p111_p10 = scmp.lt.s32.totalorder %s105_s29, %s105_s29 }
  0x17   :  { %p112_p11 = por %p111_p10, %p110_p9 }
  0x18   :  { %34 = vadd.xlane.f32.xlu0 %v33_v3 }
  0x19   :  { %p113_p12 = pnand %p112_p11, %p106_p8 }
  0xa1   :  { %v31_v4 = vpop.xlane.xlu0 %30 }
  0xa2   :  { %v36_v5 = vmul.f32 0.03125, %v31_v4 }
  0xa4   :  { %v38_v7 = vmul.f32 %v36_v5, %v36_v5  ;;  %v43_v12 = vsub.f32 %v27_v0, %v36_v5 }
  0xa5   :  { %v35_v6 = vpop.xlane.xlu0 %34 }
  0xa6   :  { %v37_v8 = vmul.f32 0.03125, %v35_v6 }
  0xa8   :  { %v39_v9 = vsub.f32 %v37_v8, %v38_v7 }
  0xaa   :  { %v40_v10 = vmax.f32 %v39_v9, 0.0 }
  0xac   :  { %v41_v11 = vadd.f32 0.0001, %v40_v10 }
  0xae   :  { %81 = vrsqrt.f32 %v41_v11 }
  0xb8   :  { %v82_v13 = vpop.eup %81 }
  0xb9   :  { %v44_v15 = vmul.f32 %v82_v13, %v43_v12 }
  0xbb   :  { %v52_v17 = vmul.f32 %v77_v14, %v44_v15 }
  0xbd   :  { %v60_v18 = vadd.f32 %v78_v16, %v52_v17 }
  0xbf   :  { %61 = vst.msk [vmem:[#allocation5] sm:$0xff] %vm28_vm0, %v60_v18 }
  0xc0   :  { %116 = shalt.err (!%p113_p12)
}
  0xc1   :  { %s117_s4 = scalar_lea.hbm %s189_s3, 128 }
  0xc2   :  { %p118_p13 = scmp.ne.s32.totalorder %s189_s3, %s117_s4  ;;  %p121_p0 = scmp.lt.u32.totalorder %s117_s4, %s189_s3 }
  0xc4   :  { %p123_p1 = pnand %p121_p0, %p118_p13 }
  0xc6   :  { %126 = shalt.err (!%p123_p1)
}
  0xc7   :  { %71 = dma.vmem_to_hbm [thread:$0]  %s69_s28, 128, %s189_s3, [#allocation4]  }
  0xc8   :  { %129 = dma.done.wait [#allocation4], 128  }
  0xc9   :  { %130 = vsyncadd [#allocation4], 4294967168 }
  0xca   :  { %75 = vsyncpa [#allocation3], 1 }
  0xcb   :  { %76 = vsyncpa [#allocation4], 1 }

</bundles_post_ra>
